<compile_context>
chip_gen: v7x
topology: tpu7x:2x2x1
jax: 0.10.0
libtpu: 0.0.40
codegen_flags: <defaults>
</compile_context>

<pallas_src>
import functools

import jax
import jax.numpy as jnp
import numpy as np
from jax.experimental import pallas as pl
from jax.experimental.pallas import tpu as pltpu


# ----------------------------------------------------------------------------
# Pallas kernel: one grid step = `bt` batch elements, batch fully vectorized.
# ----------------------------------------------------------------------------
def _attention_kernel(x_ref, wqkv_ref, wo_ref, bo_ref, bias_ref, o_ref, *,
                      heads, dim_head):
    """Shapes seen by the kernel:
       x_ref    : (bt, N, C)             activations
       wqkv_ref : (C, 3*inner)           fused [Wq*scale | Wk | Wv], head-major
       wo_ref   : (heads, d, oup_pad)    output projection, lane-padded
       bo_ref   : (1, oup_pad)           output bias (f32), lane-padded
       bias_ref : (heads, N, N)          relative position bias (f32)
       o_ref    : (bt, N, oup_pad)       lane-dense padded output
    """
    bt, n, c = x_ref.shape
    oup_pad = o_ref.shape[-1]
    inner = heads * dim_head
    mxu_dtype = wqkv_ref.dtype            # bf16 (default) or f32

    # (1) Fused QKV projection for the whole block and all heads at once.
    x2 = x_ref[...].reshape(bt * n, c).astype(mxu_dtype)
    qkv = jnp.dot(x2, wqkv_ref[...],
                  preferred_element_type=jnp.float32)            # (bt*n, 3*inner)

    bo = bo_ref[...]                      # hoisted: read the output bias once

    # f32 accumulator for the head-wise output projection (no concat of heads).
    # TODO(synk): for large N tiles move this into a VMEM scratch accumulator
    # (scratch_shapes=[pltpu.VMEM((N_tile, oup_pad), jnp.float32)]).
    acc = jnp.zeros((bt * n, oup_pad), jnp.float32)

    # Static unroll over heads only (small model constant); batch vectorized.
    for h in range(heads):
        lo = h * dim_head
        q = qkv[:, lo:lo + dim_head].reshape(bt, n, dim_head)
        k = qkv[:, inner + lo:inner + lo + dim_head].reshape(bt, n, dim_head)
        v = qkv[:, 2 * inner + lo:2 * inner + lo + dim_head].reshape(bt, n, dim_head)

        # Batched Q @ K^T (contract d on both sides -> no materialized K^T).
        dots = jnp.einsum('bnd,bmd->bnm',
                          q.astype(mxu_dtype), k.astype(mxu_dtype),
                          preferred_element_type=jnp.float32)    # (bt, n, n)
        dots = dots + bias_ref[h]                                # rel-pos bias

        # Numerically stable, *unnormalized* softmax; normalization deferred.
        dots = dots - jnp.max(dots, axis=-1, keepdims=True)
        p = jnp.exp(dots)
        l = jnp.sum(p, axis=-1, keepdims=True)                   # (bt, n, 1)

        ov = jnp.einsum('bnm,bmd->bnd',
                        p.astype(mxu_dtype), v.astype(mxu_dtype),
                        preferred_element_type=jnp.float32)      # (bt, n, d)
        ov = ov / l                       # deferred norm: N*d mults, not N*N

        # Per-head slice of W_out sits on the contraction axis -> accumulate.
        acc = acc + jnp.dot(ov.reshape(bt * n, dim_head).astype(mxu_dtype),
                            wo_ref[h],
                            preferred_element_type=jnp.float32)  # (bt*n, oup_pad)

    # to_out bias (dropout p=0.0 is identity); one lane-dense full-width store.
    o_ref[...] = (acc + bo).reshape(bt, n, oup_pad).astype(o_ref.dtype)


# ----------------------------------------------------------------------------
# Wrapper: fuses/scales/pads parameters, builds grid + BlockSpecs, calls Pallas.
# ----------------------------------------------------------------------------
def attention_pallas(x, w_qkv, w_out, b_out, rel_bias, *, heads, dim_head,
                     batch_block=None, mxu_dtype=jnp.bfloat16,
                     slice_output=True):
    B, N, C = x.shape
    inner = heads * dim_head
    assert w_qkv.shape == (C, 3 * inner)
    oup = w_out.shape[1]
    scale = dim_head ** (-0.5)

    # ---- grid sizing --------------------------------------------------------
    # v7x (2 TCs): keep >= 2 grid steps so dimension_semantics=("parallel",)
    # can shard the batch across both cores.  v5e/v6e (1 TC): fewer, fatter
    # steps amortize the ~0.35us/step overhead; the one extra step from this
    # default is negligible and keeps a single code path.
    if batch_block is None:
        batch_block = B // 2 if (B >= 2 and B % 2 == 0) else B
    assert B % batch_block == 0, (
        f"batch ({B}) must be divisible by batch_block ({batch_block}); "
        "pad the batch or choose another batch_block")
    bt = batch_block

    # ---- parameter prep (once, outside the kernel) --------------------------
    # to_qkv weight columns are already [q | k | v], each head-major — exactly
    # the layout the kernel slices.  Fold the softmax scale into the Q columns.
    w_all = jnp.concatenate([w_qkv[:, :inner] * scale, w_qkv[:, inner:]],
                            axis=1).astype(mxu_dtype)            # (C, 3*inner)

    # Output projection head-major and lane-padded so the accumulator and the
    # output store are full-lane (unmasked vst).
    oup_pad = 128 * pl.cdiv(oup, 128)
    wo = jnp.pad(w_out.reshape(heads, dim_head, oup),
                 ((0, 0), (0, 0), (0, oup_pad - oup))).astype(mxu_dtype)
    bo = jnp.pad(b_out, (0, oup_pad - oup)).reshape(1, oup_pad).astype(jnp.float32)
    rel_bias = rel_bias.astype(jnp.float32)

    # ---- VMEM budget & advisory cost estimate --------------------------------
    w_itm = np.dtype(mxu_dtype).itemsize
    x_itm = x.dtype.itemsize
    footprint = (2 * bt * N * C * x_itm              # double-buffered x block
                 + 2 * bt * N * oup_pad * x_itm      # double-buffered out block
                 + (w_all.size + wo.size) * w_itm    # resident weights
                 + (bo.size + rel_bias.size) * 4)    # resident f32 bias tensors
    vmem_limit = int(min(32 << 20, max(16 << 20, 4 * footprint)))

    flops = (2 * B * N * C * 3 * inner               # fused QKV projection
             + 4 * B * heads * N * N * dim_head      # QK^T and PV
             + 2 * B * N * inner * oup_pad)          # output projection (padded)
    bytes_accessed = int(B * N * C * x_itm
                         + (w_all.size + wo.size) * w_itm
                         + (bo.size + rel_bias.size) * 4
                         + B * N * oup_pad * x_itm)
    cost = pl.CostEstimate(flops=int(flops),
                           transcendentals=int(B * heads * N * N),
                           bytes_accessed=bytes_accessed)

    kernel = functools.partial(_attention_kernel, heads=heads, dim_head=dim_head)

    out_padded = pl.pallas_call(
        kernel,
        out_shape=jax.ShapeDtypeStruct((B, N, oup_pad), x.dtype),
        grid=(B // bt,),
        in_specs=[
            pl.BlockSpec((bt, N, C), lambda i: (i, 0, 0)),                 # x
            pl.BlockSpec((C, 3 * inner), lambda i: (0, 0)),                # Wqkv (fused, scaled)
            pl.BlockSpec((heads, dim_head, oup_pad), lambda i: (0, 0, 0)), # W_out
            pl.BlockSpec((1, oup_pad), lambda i: (0, 0)),                  # b_out
            pl.BlockSpec((heads, N, N), lambda i: (0, 0, 0)),              # rel. bias
        ],
        out_specs=pl.BlockSpec((bt, N, oup_pad), lambda i: (i, 0, 0)),
        compiler_params=pltpu.CompilerParams(
            dimension_semantics=("parallel",),       # batch steps independent
            vmem_limit_bytes=vmem_limit),
        cost_estimate=cost,
    )(x, w_all, wo, bo, rel_bias)

    if slice_output:
        # For best perf pass slice_output=False and fuse this slice into the
        # consumer instead of an extra whole-output HBM round trip here.
        return out_padded[..., :oup]
    return out_padded


# ----------------------------------------------------------------------------
# Relative-position bias (glue: static index table + gather, plain JAX/numpy).
# ----------------------------------------------------------------------------
def make_relative_index(ih, iw):
    ii, jj = np.meshgrid(np.arange(ih), np.arange(iw), indexing="ij")
    coords = np.stack([ii, jj]).reshape(2, -1)                  # (2, n)
    rel = coords[:, :, None] - coords[:, None, :]               # (2, n, n)
    rel[0] += ih - 1
    rel[1] += iw - 1
    rel[0] *= 2 * iw - 1
    rel = np.transpose(rel, (1, 2, 0))                          # 'c h w -> h w c'
    return rel.sum(-1).reshape(-1)                              # (n*n,)


def gather_relative_bias(table, relative_index, n, heads):
    # table: ((2ih-1)*(2iw-1), heads) -> bias (heads, n, n)
    bias = table[relative_index]                                # (n*n, heads)
    bias = bias.reshape(n, n, heads)                            # '(h w) c -> h w c'
    return jnp.transpose(bias, (2, 0, 1))                       # -> (heads, n, n)


# ----------------------------------------------------------------------------
# Pure-JAX reference (mirrors the PyTorch forward) for verification.
# ----------------------------------------------------------------------------
def attention_ref(x, w_qkv, w_out, b_out, rel_bias, *, heads, dim_head):
    B, N, C = x.shape
    inner = heads * dim_head
    scale = dim_head ** (-0.5)
    qkv = x @ w_qkv                                             # (B, N, 3*inner)
    q, k, v = jnp.split(qkv, 3, axis=-1)

    def split_heads(t):
        return jnp.transpose(t.reshape(B, N, heads, dim_head), (0, 2, 1, 3))

    q, k, v = map(split_heads, (q, k, v))                       # (B, h, N, d)
    dots = jnp.einsum("bhnd,bhmd->bhnm", q, k) * scale
    dots = dots + rel_bias[None]                                # (1, h, N, N)
    attn = jax.nn.softmax(dots, axis=-1)
    out = jnp.einsum("bhnm,bhmd->bhnd", attn, v)
    out = jnp.transpose(out, (0, 2, 1, 3)).reshape(B, N, inner)
    return out @ w_out + b_out


# ----------------------------------------------------------------------------
if __name__ == "__main__":
    # Small shapes consistent with the module.
    B = 4
    inp = 8
    oup = 16
    ih, iw = 4, 4
    heads, dim_head = 2, 8
    N = ih * iw
    inner = heads * dim_head

    key = jax.random.PRNGKey(0)
    k_x, k_qkv, k_out, k_bout, k_tab = jax.random.split(key, 5)

    x = jax.random.normal(k_x, (B, N, inp), jnp.float32)
    # nn.Linear(inp, 3*inner, bias=False): stored transposed as (inp, 3*inner)
    w_qkv = jax.random.normal(k_qkv, (inp, 3 * inner), jnp.float32) * 0.1
    # nn.Linear(inner, oup): stored transposed as (inner, oup) plus bias (oup,)
    w_out = jax.random.normal(k_out, (inner, oup), jnp.float32) * 0.1
    b_out = jax.random.normal(k_bout, (oup,), jnp.float32) * 0.1
    # relative_bias_table: ((2ih-1)*(2iw-1), heads) — random so the bias path
    # is actually exercised (torch inits it to zeros).
    rel_table = jax.random.normal(k_tab, ((2 * ih - 1) * (2 * iw - 1), heads),
                                  jnp.float32) * 0.1

    rel_index = jnp.asarray(make_relative_index(ih, iw))             # (N*N,)
    rel_bias = gather_relative_bias(rel_table, rel_index, N, heads)  # (heads, N, N)

    ref = attention_ref(x, w_qkv, w_out, b_out, rel_bias,
                        heads=heads, dim_head=dim_head)

    # (1) exact path: f32 MXU operands (all casts are no-ops) — tight check.
    attn_f32 = jax.jit(functools.partial(
        attention_pallas, heads=heads, dim_head=dim_head,
        batch_block=2, mxu_dtype=jnp.float32))
    out_f32 = jax.block_until_ready(attn_f32(x, w_qkv, w_out, b_out, rel_bias))
    assert out_f32.shape == (B, N, oup)
    np.testing.assert_allclose(np.asarray(out_f32), np.asarray(ref),
                               rtol=1e-3, atol=1e-3)

    # (2) production path: bf16 MXU operands, f32 accumulation & softmax —
    #     tolerance relaxed only for operand rounding.
    attn_bf16 = jax.jit(functools.partial(
        attention_pallas, heads=heads, dim_head=dim_head,
        batch_block=2, mxu_dtype=jnp.bfloat16))
    out_bf16 = jax.block_until_ready(attn_bf16(x, w_qkv, w_out, b_out, rel_bias))
    assert out_bf16.shape == (B, N, oup)
    np.testing.assert_allclose(np.asarray(out_bf16), np.asarray(ref),
                               rtol=2e-2, atol=2e-2)

    print("KERNEL_OK")
</pallas_src>

<mosaic_0001>
module attributes {stable_mosaic.version = 11 : i64} {
  func.func @_attention_kernel(%arg0: i32, %arg1: memref<2x16x8xf32, #tpu.memory_space<vmem>>, %arg2: memref<8x48xf32, #tpu.memory_space<vmem>>, %arg3: memref<2x8x128xf32, #tpu.memory_space<vmem>>, %arg4: memref<1x128xf32, #tpu.memory_space<vmem>>, %arg5: memref<2x16x16xf32, #tpu.memory_space<vmem>>, %arg6: memref<2x16x128xf32, #tpu.memory_space<vmem>>) attributes {dimension_semantics = [#tpu.dimension_semantics<parallel>], iteration_bounds = array<i64: 2>, scalar_prefetch = 0 : i64, scratch_operands = 0 : i64, tpu.core_type = #tpu.core_type<tc>, window_params = [{transform_indices = @transform_0, window_bounds = array<i64: 2, 16, 8>}, {pipeline_mode = #tpu.pipeline_mode<synchronous>, transform_indices = @transform_1, window_bounds = array<i64: 8, 48>}, {pipeline_mode = #tpu.pipeline_mode<synchronous>, transform_indices = @transform_2, window_bounds = array<i64: 2, 8, 128>}, {pipeline_mode = #tpu.pipeline_mode<synchronous>, transform_indices = @transform_3, window_bounds = array<i64: 1, 128>}, {pipeline_mode = #tpu.pipeline_mode<synchronous>, transform_indices = @transform_4, window_bounds = array<i64: 2, 16, 16>}, {transform_indices = @transform_5, window_bounds = array<i64: 2, 16, 128>}]} {
    %c0 = arith.constant 0 : index
    %c0_0 = arith.constant 0 : index
    %c0_1 = arith.constant 0 : index
    %0 = vector.load %arg1[%c0, %c0_0, %c0_1] : memref<2x16x8xf32, #tpu.memory_space<vmem>>, vector<2x16x8xf32>
    %1 = vector.shape_cast %0 : vector<2x16x8xf32> to vector<32x8xf32>
    %c0_2 = arith.constant 0 : index
    %c0_3 = arith.constant 0 : index
    %2 = vector.load %arg2[%c0_2, %c0_3] : memref<8x48xf32, #tpu.memory_space<vmem>>, vector<8x48xf32>
    %cst = arith.constant dense<0.000000e+00> : vector<32x48xf32>
    %3 = tpu.matmul %1, %2, %cst {dimension_numbers = #tpu.dot_dimension_numbers<[1], [0], [0], [1], [0, 0, 1, 1], [], []>} : vector<32x8xf32>, vector<8x48xf32>, vector<32x48xf32> -> vector<32x48xf32>
    %c0_4 = arith.constant 0 : index
    %c0_5 = arith.constant 0 : index
    %4 = vector.load %arg4[%c0_4, %c0_5] : memref<1x128xf32, #tpu.memory_space<vmem>>, vector<1x128xf32>
    %cst_6 = arith.constant 0.000000e+00 : f32
    %5 = vector.broadcast %cst_6 : f32 to vector<32x128xf32>
    %6 = vector.extract_strided_slice %3 {offsets = [0, 0], sizes = [32, 8], strides = [1, 1]} : vector<32x48xf32> to vector<32x8xf32>
    %7 = vector.shape_cast %6 : vector<32x8xf32> to vector<2x16x8xf32>
    %8 = vector.extract_strided_slice %3 {offsets = [0, 16], sizes = [32, 8], strides = [1, 1]} : vector<32x48xf32> to vector<32x8xf32>
    %9 = vector.shape_cast %8 : vector<32x8xf32> to vector<2x16x8xf32>
    %10 = vector.extract_strided_slice %3 {offsets = [0, 32], sizes = [32, 8], strides = [1, 1]} : vector<32x48xf32> to vector<32x8xf32>
    %11 = vector.shape_cast %10 : vector<32x8xf32> to vector<2x16x8xf32>
    "tpu.trace_start"() <{level = 10 : i32, message = "bnd,bmd->bnm"}> : () -> ()
    %cst_7 = arith.constant dense<0.000000e+00> : vector<2x16x16xf32>
    %12 = tpu.matmul %7, %9, %cst_7 {dimension_numbers = #tpu.dot_dimension_numbers<[2], [2], [1], [1], [0, 0, 0, 1, 1, 1], [0], [0]>} : vector<2x16x8xf32>, vector<2x16x8xf32>, vector<2x16x16xf32> -> vector<2x16x16xf32>
    "tpu.trace_stop"() : () -> ()
    %c0_8 = arith.constant 0 : index
    %c0_9 = arith.constant 0 : index
    %c0_10 = arith.constant 0 : index
    %13 = vector.load %arg5[%c0_8, %c0_9, %c0_10] : memref<2x16x16xf32, #tpu.memory_space<vmem>>, vector<1x16x16xf32>
    %14 = vector.shape_cast %13 : vector<1x16x16xf32> to vector<16x16xf32>
    %15 = vector.shape_cast %14 : vector<16x16xf32> to vector<1x16x16xf32>
    %16 = vector.broadcast %15 : vector<1x16x16xf32> to vector<2x16x16xf32>
    %17 = arith.addf %12, %16 : vector<2x16x16xf32>
    %cst_11 = arith.constant dense<0xFF800000> : vector<2x16xf32>
    %18 = vector.multi_reduction <maximumf>, %17, %cst_11 [2] : vector<2x16x16xf32> to vector<2x16xf32>
    %19 = vector.shape_cast %18 : vector<2x16xf32> to vector<2x16x1xf32>
    %20 = vector.broadcast %19 : vector<2x16x1xf32> to vector<2x16x16xf32>
    %21 = arith.subf %17, %20 : vector<2x16x16xf32>
    %22 = math.exp %21 : vector<2x16x16xf32>
    %cst_12 = arith.constant dense<0.000000e+00> : vector<2x16xf32>
    %23 = vector.multi_reduction <add>, %22, %cst_12 [2] : vector<2x16x16xf32> to vector<2x16xf32>
    %24 = vector.shape_cast %23 : vector<2x16xf32> to vector<2x16x1xf32>
    "tpu.trace_start"() <{level = 10 : i32, message = "bnm,bmd->bnd"}> : () -> ()
    %cst_13 = arith.constant dense<0.000000e+00> : vector<2x16x8xf32>
    %25 = tpu.matmul %22, %11, %cst_13 {dimension_numbers = #tpu.dot_dimension_numbers<[2], [1], [1], [2], [0, 0, 0, 1, 1, 2], [0], [0]>} : vector<2x16x16xf32>, vector<2x16x8xf32>, vector<2x16x8xf32> -> vector<2x16x8xf32>
    "tpu.trace_stop"() : () -> ()
    %26 = vector.broadcast %24 : vector<2x16x1xf32> to vector<2x16x8xf32>
    %27 = arith.divf %25, %26 : vector<2x16x8xf32>
    %28 = vector.shape_cast %27 : vector<2x16x8xf32> to vector<32x8xf32>
    %c0_14 = arith.constant 0 : index
    %c0_15 = arith.constant 0 : index
    %c0_16 = arith.constant 0 : index
    %29 = vector.load %arg3[%c0_14, %c0_15, %c0_16] : memref<2x8x128xf32, #tpu.memory_space<vmem>>, vector<1x8x128xf32>
    %30 = vector.shape_cast %29 : vector<1x8x128xf32> to vector<8x128xf32>
    %cst_17 = arith.constant dense<0.000000e+00> : vector<32x128xf32>
    %31 = tpu.matmul %28, %30, %cst_17 {dimension_numbers = #tpu.dot_dimension_numbers<[1], [0], [0], [1], [0, 0, 1, 1], [], []>} : vector<32x8xf32>, vector<8x128xf32>, vector<32x128xf32> -> vector<32x128xf32>
    %32 = arith.addf %5, %31 : vector<32x128xf32>
    %33 = vector.extract_strided_slice %3 {offsets = [0, 8], sizes = [32, 8], strides = [1, 1]} : vector<32x48xf32> to vector<32x8xf32>
    %34 = vector.shape_cast %33 : vector<32x8xf32> to vector<2x16x8xf32>
    %35 = vector.extract_strided_slice %3 {offsets = [0, 24], sizes = [32, 8], strides = [1, 1]} : vector<32x48xf32> to vector<32x8xf32>
    %36 = vector.shape_cast %35 : vector<32x8xf32> to vector<2x16x8xf32>
    %37 = vector.extract_strided_slice %3 {offsets = [0, 40], sizes = [32, 8], strides = [1, 1]} : vector<32x48xf32> to vector<32x8xf32>
    %38 = vector.shape_cast %37 : vector<32x8xf32> to vector<2x16x8xf32>
    "tpu.trace_start"() <{level = 10 : i32, message = "bnd,bmd->bnm"}> : () -> ()
    %cst_18 = arith.constant dense<0.000000e+00> : vector<2x16x16xf32>
    %39 = tpu.matmul %34, %36, %cst_18 {dimension_numbers = #tpu.dot_dimension_numbers<[2], [2], [1], [1], [0, 0, 0, 1, 1, 1], [0], [0]>} : vector<2x16x8xf32>, vector<2x16x8xf32>, vector<2x16x16xf32> -> vector<2x16x16xf32>
    "tpu.trace_stop"() : () -> ()
    %c1 = arith.constant 1 : index
    %c0_19 = arith.constant 0 : index
    %c0_20 = arith.constant 0 : index
    %40 = vector.load %arg5[%c1, %c0_19, %c0_20] : memref<2x16x16xf32, #tpu.memory_space<vmem>>, vector<1x16x16xf32>
    %41 = vector.shape_cast %40 : vector<1x16x16xf32> to vector<16x16xf32>
    %42 = vector.shape_cast %41 : vector<16x16xf32> to vector<1x16x16xf32>
    %43 = vector.broadcast %42 : vector<1x16x16xf32> to vector<2x16x16xf32>
    %44 = arith.addf %39, %43 : vector<2x16x16xf32>
    %cst_21 = arith.constant dense<0xFF800000> : vector<2x16xf32>
    %45 = vector.multi_reduction <maximumf>, %44, %cst_21 [2] : vector<2x16x16xf32> to vector<2x16xf32>
    %46 = vector.shape_cast %45 : vector<2x16xf32> to vector<2x16x1xf32>
    %47 = vector.broadcast %46 : vector<2x16x1xf32> to vector<2x16x16xf32>
    %48 = arith.subf %44, %47 : vector<2x16x16xf32>
    %49 = math.exp %48 : vector<2x16x16xf32>
    %cst_22 = arith.constant dense<0.000000e+00> : vector<2x16xf32>
    %50 = vector.multi_reduction <add>, %49, %cst_22 [2] : vector<2x16x16xf32> to vector<2x16xf32>
    %51 = vector.shape_cast %50 : vector<2x16xf32> to vector<2x16x1xf32>
    "tpu.trace_start"() <{level = 10 : i32, message = "bnm,bmd->bnd"}> : () -> ()
    %cst_23 = arith.constant dense<0.000000e+00> : vector<2x16x8xf32>
    %52 = tpu.matmul %49, %38, %cst_23 {dimension_numbers = #tpu.dot_dimension_numbers<[2], [1], [1], [2], [0, 0, 0, 1, 1, 2], [0], [0]>} : vector<2x16x16xf32>, vector<2x16x8xf32>, vector<2x16x8xf32> -> vector<2x16x8xf32>
    "tpu.trace_stop"() : () -> ()
    %53 = vector.broadcast %51 : vector<2x16x1xf32> to vector<2x16x8xf32>
    %54 = arith.divf %52, %53 : vector<2x16x8xf32>
    %55 = vector.shape_cast %54 : vector<2x16x8xf32> to vector<32x8xf32>
    %c1_24 = arith.constant 1 : index
    %c0_25 = arith.constant 0 : index
    %c0_26 = arith.constant 0 : index
    %56 = vector.load %arg3[%c1_24, %c0_25, %c0_26] : memref<2x8x128xf32, #tpu.memory_space<vmem>>, vector<1x8x128xf32>
    %57 = vector.shape_cast %56 : vector<1x8x128xf32> to vector<8x128xf32>
    %cst_27 = arith.constant dense<0.000000e+00> : vector<32x128xf32>
    %58 = tpu.matmul %55, %57, %cst_27 {dimension_numbers = #tpu.dot_dimension_numbers<[1], [0], [0], [1], [0, 0, 1, 1], [], []>} : vector<32x8xf32>, vector<8x128xf32>, vector<32x128xf32> -> vector<32x128xf32>
    %59 = arith.addf %32, %58 : vector<32x128xf32>
    %60 = vector.broadcast %4 : vector<1x128xf32> to vector<32x128xf32>
    %61 = arith.addf %59, %60 : vector<32x128xf32>
    %62 = vector.shape_cast %61 : vector<32x128xf32> to vector<2x16x128xf32>
    %c0_28 = arith.constant 0 : index
    %c0_29 = arith.constant 0 : index
    %c0_30 = arith.constant 0 : index
    %63 = vector.load %arg6[%c0_28, %c0_29, %c0_30] : memref<2x16x128xf32, #tpu.memory_space<vmem>>, vector<2x16x128xf32>
    tpu.vector_store %arg6[%c0_28, %c0_29, %c0_30], %62 {strides = array<i32>} : memref<2x16x128xf32, #tpu.memory_space<vmem>>, vector<2x16x128xf32>,
    return
  }
  func.func @transform_0(%arg0: i32) -> (i32, i32, i32) {
    %c0_i32 = arith.constant 0 : i32
    %c0_i32_0 = arith.constant 0 : i32
    %c0_i32_1 = arith.constant 0 : i32
    return %arg0, %c0_i32, %c0_i32_0 : i32, i32, i32
  }
  func.func @transform_1(%arg0: i32) -> (i32, i32) {
    %c0_i32 = arith.constant 0 : i32
    %c0_i32_0 = arith.constant 0 : i32
    %c0_i32_1 = arith.constant 0 : i32
    return %c0_i32, %c0_i32_0 : i32, i32
  }
  func.func @transform_2(%arg0: i32) -> (i32, i32, i32) {
    %c0_i32 = arith.constant 0 : i32
    %c0_i32_0 = arith.constant 0 : i32
    %c0_i32_1 = arith.constant 0 : i32
    %c0_i32_2 = arith.constant 0 : i32
    return %c0_i32, %c0_i32_0, %c0_i32_1 : i32, i32, i32
  }
  func.func @transform_3(%arg0: i32) -> (i32, i32) {
    %c0_i32 = arith.constant 0 : i32
    %c0_i32_0 = arith.constant 0 : i32
    %c0_i32_1 = arith.constant 0 : i32
    return %c0_i32, %c0_i32_0 : i32, i32
  }
  func.func @transform_4(%arg0: i32) -> (i32, i32, i32) {
    %c0_i32 = arith.constant 0 : i32
    %c0_i32_0 = arith.constant 0 : i32
    %c0_i32_1 = arith.constant 0 : i32
    %c0_i32_2 = arith.constant 0 : i32
    return %c0_i32, %c0_i32_0, %c0_i32_1 : i32, i32, i32
  }
  func.func @transform_5(%arg0: i32) -> (i32, i32, i32) {
    %c0_i32 = arith.constant 0 : i32
    %c0_i32_0 = arith.constant 0 : i32
    %c0_i32_1 = arith.constant 0 : i32
    return %arg0, %c0_i32, %c0_i32_0 : i32, i32, i32
  }
}

</mosaic_0001>

<bundles_post_ra>
// kernel: attention_pallas.1
= control target key start
LH: loop header
LB: loop body
LE: loop exit
PB: predicated region body
PF: predicated region fallthrough
CT: control target
= control target key end

     0   :  { %10 = vsyncpa [#allocation3], 0  ;;  %s2103_s0 = inlined_call_operand.vmem [shape: f32[4,16,8], index: 0, kind: input, shape index: {}]   ;;  %s2104_s1 = inlined_call_operand.vmem [shape: f32[8,48], index: 1, kind: input, shape index: {}]   ;;  %s2105_s2 = inlined_call_operand.vmem [shape: f32[2,8,128], index: 2, kind: input, shape index: {}]   ;;  %s2106_s3 = inlined_call_operand.vmem [shape: f32[1,128], index: 3, kind: input, shape index: {}]   ;;  %s2107_s4 = inlined_call_operand.vmem [shape: f32[2,16,16], index: 4, kind: input, shape index: {}]   ;;  %s2108_s5 = inlined_call_operand.hbm [shape: f32[4,16,128], index: 5, kind: output, shape index: {}]  }
   0x1   :  { %12 = vsyncpa [#allocation3 + $0x1], 0  ;;  %s1871_s18 = smov 0   ;;  %s1873_s19 = smov 0  }
   0x2   :  { %s1875_s20 = smov 0   ;;  %s1877_s21 = smov 0  }
   0x3 LB: > { %s1892_s22 = sadd.s32 4294967295, %s1831_s21   ;;  %s1423_s23 = sadd.s32 4294967294, %s1831_s21   ;;  %s1831_s21 = sphi %s1877_s21, %s2116_s21   ;;  %s1827_s20 = sphi %s1875_s20, %s2115_s20   ;;  %s1823_s19 = sphi %s1873_s19, %s2114_s19   ;;  %s1819_s18 = sphi %s1871_s18, %s2113_s18  }
   0x4   : > { %s1896_s24 = sadd.s32 1, %s1831_s21   ;;  %s135_s25 = sadd.s32 1, %s1827_s20 }
   0x5   : > { %s132_s26 = ssub.s32 %s1831_s21, %s1896_s24  ;;  %p145_p0 = scmp.ne.s32.totalorder %s1827_s20, %s1823_s19 }
   0x6   : > { %p133_p1 = scmp.eq.s32.totalorder %s132_s26, 0  ;;  %p146_p2 = scmp.eq.s32.totalorder %s1892_s22, 1 }
   0x7   : > { %p151_p3 = scmp.ne.s32.totalorder %s1823_s19, %s1819_s18  ;;  %p152_p4 = scmp.eq.s32.totalorder %s1423_s23, 1 }
   0x8   : > { %s1907_s27 = scalar_select %p133_p1, %s1827_s20, %s135_s25  }
   0x9   : > { %p1909_p5 = por %p146_p2, %p145_p0  ;;  %p1913_p6 = por %p152_p4, %p151_p3 }
   0xa   : > { %p1426_p7 = scmp.ge.s32.totalorder %s1831_s21, 1  ;;  %p192_p8 = scmp.lt.s32.totalorder %s1831_s21, 3 }
   0xc   : > { %p193_p9 = pnand %p1426_p7, %p192_p8 }
   0xd   : > { %v233_v0 = vld [vmem:[%s2104_s1] sm:$0xff] (!%p193_p9)  ;;  %s1428_s7 = sshll.u32 (!%p193_p9), %s1892_s22, 1  ;;  %vm234_vm0 = vcmask (!%p193_p9), 64512   ;;  %s1833_s12 = smov (!%p193_p9), 112   ;;  %v334_v20 = vld [vmem:[%s2107_s4 + $0x8] sm:$0xff] (!%p193_p9)  ;;  %vm513_vm2 = vcmask (!%p193_p9), 130048  }
   0xe   : > { %196 = sbr.rel (%p193_p9) target bundleno = 1590 (0x636), region = 40  ;;  %1527 = vmatprep.subr.mxu0 (!%p193_p9), %v233_v0  ;;  %p222_p10 = scmp.lt.s32.totalorder (!%p193_p9), %s1428_s7, 3  ;;  %vm1939_vm1 = vmpackc.low (!%p193_p9), %vm234_vm0, %vm234_vm0  ;;  %v333_v22 = vld [vmem:[%s2107_s4] sm:$0xff] (!%p193_p9) }
   0xf   : > { %1528 = vmatpush3.msra.mxu0 (!%p193_p9), %v233_v0  ;;  %s1834_s17 = smov (!%p193_p9), 96   ;;  %s1835_s23 = smov (!%p193_p9), 120  }
  0x10   : > { %s1836_s25 = smov (!%p193_p9), 104   ;;  %s218_s13 = sand.u32 (!%p193_p9), 1, %s1823_s19  }
  0x11   : > { %s1427_s14 = sshll.u32 (!%p193_p9), %s218_s13, 5 }
  0x15   : > { %s2118_s7 = smov (!%p222_p10, %s1428_s7), 3 }
  0x16   : > { %s1477_s8 = sshll.u32 %s2118_s7, 4  ;;  %s2062_s7 = scalar_lea.sflag [#allocation3], %s218_s13 }
  0x17   : > { %s226_s11 = scalar_lea.vmem %s2103_s0, %s1477_s8  ;;  %s1837_s8 = smov 88  }
  0x18   : > { %v229_v1 = vld [vmem:[%s226_s11] sm:$0xff]  ;;  %v230_v2 = vld [vmem:[%s226_s11 + $0x8] sm:$0xff]  ;;  %v231_v3 = vld [vmem:[%s226_s11 + $0x10] sm:$0xff] }
  0x19   : > { %1529 = vmatprep.mubr.msk.f32.mxu0 %vm234_vm0, %v229_v1  ;;  %v232_v4 = vld [vmem:[%s226_s11 + $0x18] sm:$0xff] }
  0x1a   : > { %1530 = vmatmul.mubr.msk.f32.vlgmr.msra.gmra.mrb[0].mxu0 %vm234_vm0, %v230_v2 }
  0x1b   : > { %1532 = vmatprep.mubr.msk.f32.mxu0 %vm234_vm0, %v231_v3 }
  0x1e   : > { %1533 = vmatmul.mubr.msk.f32.gmra.mrb[2].mxu0 %vm234_vm0, %v232_v4 }
  0xed   : > { %v1531_v5 = vpop.f32.mrb[0].mxu0 }
  0xee   : > { %v313_v6 = vpop.f32.mrb[1].mxu0 }
  0xef   : > { %1539 = vmatprep.mubr.msk.f32.mxu0 %vm234_vm0, %v313_v6  ;;  %v1931_v7 = vpack.i.bf16 %v1531_v5, %v313_v6 }
  0xf1   : > { %1698 = vrot.lane.b32.xlu0 %v1931_v7, %s1833_s12  ;;  %v1534_v8 = vpop.f32.mrb[2].mxu0 }
  0xf2   : > { %v323_v9 = vpop.f32.mrb[3].mxu0 }
  0xf3   : > { %v1934_v10 = vpack.i.bf16 %v1534_v8, %v323_v9 }
  0xf5   : > { %1703 = vrot.lane.b32.xlu0 %v1934_v10, %s1833_s12 }
 0x163   : > { %v1699_v11 = vpop.permute.xlu0 %1698 }
 0x164   : > { %v1701_v12 = vunpack.i.h.bf16 %v1699_v11  ;;  %v1700_v13 = vunpack.i.l.bf16 %v1699_v11 }
 0x166   : > { %v1607_v15 = vpack.c.bf16 %v1701_v12, %v1700_v13  ;;  %v1448_v12 = vld [vmem:[%s2107_s4 + $0x18] sm:$0xff]  ;;  %v1447_v13 = vld [vmem:[%s2107_s4 + $0x10] sm:$0xff] }
 0x167   : > { %v1704_v16 = vpop.permute.xlu0 %1703 }
 0x168   : > { %1609 = vmatprep.subr.msk.bf16.mxu0 %vm1939_vm1, %v1607_v15  ;;  %v1706_v17 = vunpack.i.h.bf16 %v1704_v16  ;;  %v1705_v18 = vunpack.i.l.bf16 %v1704_v16 }
 0x169   : > { %1612 = vmatpush3.bf16.xpose.msk.msra.mxu0 %vm1939_vm1, %v1607_v15 }
 0x16a   : > { %v1613_v19 = vpack.c.bf16 %v1706_v17, %v1705_v18 }
 0x16c   : > { %1615 = vmatprep.subr.msk.bf16.mxu0 %vm1939_vm1, %v1613_v19 }
 0x170   : > { %1540 = vmatmul.mubr.msk.f32.vlgmr.msra.gmra.mrb[4].mxu0 %vm234_vm0, %v1531_v5 }
 0x171   : > { %1618 = vmatpush3.bf16.xpose.msk.msra.mxu0 %vm1939_vm1, %v1613_v19  ;;  %1546 = vmatprep.mubr.msk.f32.mxu0 %vm234_vm0, %v323_v9 }
 0x178   : > { %1547 = vmatmul.mubr.msk.f32.vlgmr.msra.gmra.mrb[6].mxu0 %vm234_vm0, %v1534_v8 }
 0x243   : > { %v1541_v21 = vpop.f32.mrb[4].mxu0 }
 0x244   : > { %v421_v23 = vadd.f32 %v1541_v21, %v334_v20  ;;  %v415_v24 = vpop.f32.mrb[5].mxu0 }
 0x245   : > { %v416_v25 = vadd.f32 %v415_v24, %v333_v22 }
 0x246   : > { %v517_v26 = vsel %vm513_vm2, %v421_v23, -inf }
 0x247   : > { %518 = vmax.xlane.f32.xlu1 %v517_v26  ;;  %v514_v27 = vsel %vm513_vm2, %v416_v25, -inf }
 0x24b   : > { %v1548_v28 = vpop.f32.mrb[6].mxu0  ;;  %515 = vmax.xlane.f32.xlu1 %v514_v27 }
 0x24c   : > { %v510_v29 = vadd.f32 %v1548_v28, %v334_v20  ;;  %v504_v30 = vpop.f32.mrb[7].mxu0 }
 0x24d   : > { %v505_v31 = vadd.f32 %v504_v30, %v333_v22 }
 0x24e   : > { %v523_v32 = vsel %vm513_vm2, %v510_v29, -inf }
 0x24f   : > { %524 = vmax.xlane.f32.xlu1 %v523_v32  ;;  %v520_v33 = vsel %vm513_vm2, %v505_v31, -inf }
 0x250   : > { %521 = vmax.xlane.f32.xlu0 %v520_v33 }
 0x260   : > { %1708 = vrot.lane.b32.xlu1 %v1931_v7, %s1834_s17 }
 0x264   : > { %1713 = vrot.lane.b32.xlu1 %v1934_v10, %s1834_s17  ;;  %s220_s17 = scalar_lea.vmem [#allocation2], %s1427_s14 }
 0x266   : > { %736 = vrot.lane.b32.xlu0 %v313_v6, %s1835_s23 }
 0x268   : > { %1718 = vrot.lane.b32.xlu1 %v1931_v7, %s1836_s25 }
 0x26c   : > { %1723 = vrot.lane.b32.xlu1 %v1934_v10, %s1836_s25  ;;  %s1479_s25 = sshll.u32 %s1892_s22, 9 }
 0x26d   : > { %s2060_s6 = scalar_lea.hbm %s2108_s5, %s1479_s25 }
 0x270   : > { %738 = vrot.lane.b32.xlu1 %v1531_v5, %s1835_s23 }
 0x274   : > { %827 = vrot.lane.b32.xlu1 %v323_v9, %s1835_s23 }
 0x278   : > { %829 = vrot.lane.b32.xlu1 %v1534_v8, %s1835_s23  ;;  %s1361_s23 = sshll.u32 %s220_s17, 4  ;;  %s2055_s23 = int_to_ptr.vmem [resolvable:$true] %s1361_s23 }
 0x279   : > { %s1769_s22 = scalar_lea.vmem %s2055_s23, 512 }
 0x27a   : > { %p1770_p11 = scmp.ne.s32.totalorder %s2055_s23, %s1769_s22 }
 0x27c   : > { %p1771_p12 = pnand %p1770_p11, %p1909_p5 }
 0x27e   : > { %p1772_p13 = pneg %p1771_p12 }
 0x2d4   : > { %v519_v34 = vpop.xlane.xlu1 %518 }
 0x2d5   : > { %v527_v35 = vsub.f32 %v421_v23, %v519_v34 }
 0x2d7   : > { %v532_v38 = vmul.f32 1.442695, %v527_v35 }
 0x2d8   : > { %v516_v36 = vpop.xlane.xlu1 %515 }
 0x2d9   : > { %v526_v37 = vsub.f32 %v416_v25, %v516_v36 }
 0x2db   : > { %v530_v39 = vmul.f32 1.442695, %v526_v37 }
 0x2dc   : > { %v525_v40 = vpop.xlane.xlu1 %524 }
 0x2dd   : > { %1737 = vpow2.f32 %v530_v39  ;;  %v529_v41 = vsub.f32 %v510_v29, %v525_v40  ;;  %v522_v42 = vpop.xlane.xlu0 %521 }
 0x2de   : > { %1739 = vpow2.f32 %v532_v38  ;;  %v528_v43 = vsub.f32 %v505_v31, %v522_v42 }
 0x2df   : > { %v536_v44 = vmul.f32 1.442695, %v529_v41 }
 0x2e0   : > { %v534_v45 = vmul.f32 1.442695, %v528_v43  ;;  %v1709_v46 = vpop.permute.xlu1 %1708 }
 0x2e1   : > { %v1711_v47 = vunpack.i.h.bf16 %v1709_v46  ;;  %v1710_v48 = vunpack.i.l.bf16 %v1709_v46  ;;  %v737_v57 = vpop.permute.xlu0 %736 }
 0x2e2   : > { %1741 = vpow2.f32 %v534_v45 }
 0x2e3   : > { %1743 = vpow2.f32 %v536_v44  ;;  %v1619_v49 = vpack.c.bf16 %v1711_v47, %v1710_v48 }
 0x2e4   : > { %v1714_v50 = vpop.permute.xlu1 %1713 }
 0x2e5   : > { %v1716_v51 = vunpack.i.h.bf16 %v1714_v50  ;;  %v1715_v52 = vunpack.i.l.bf16 %v1714_v50  ;;  %1620 = vmatprep.subr.bf16.mxu1 %v1619_v49 }
 0x2e6   : > { %1622 = vmatpush3.bf16.msra.mxu1 %v1619_v49 }
 0x2e7   : > { %v1968_v53 = vpop.eup %1737  ;;  %v1623_v54 = vpack.c.bf16 %v1716_v51, %v1715_v52 }
 0x2e8   : > { %v1970_v55 = vpop.eup %1739  ;;  %1553 = vmatprep.mubr.msk.f32.mxu1 %vm513_vm2, %v1968_v53  ;;  %v1719_v56 = vpop.permute.xlu1 %1718 }
 0x2e9   : > { %v1721_v58 = vunpack.i.h.bf16 %v1719_v56  ;;  %v1720_v59 = vunpack.i.l.bf16 %v1719_v56  ;;  %1554 = vmatmul.mubr.msk.f32.vlgmr.msra.gmra.mrb[0].mxu1 %vm513_vm2, %v1970_v55  ;;  %1624 = vmatprep.subr.bf16.mxu0 %v1623_v54  ;;  %v541_v52 = vsel %vm513_vm2, %v1970_v55, 0.0  ;;  %v732_v55 = vld [vmem:[%s2105_s2] sm:$0xff] }
 0x2ea   : > { %1626 = vmatpush3.bf16.msra.mxu0 %v1623_v54  ;;  %1567 = vmatprep.mubr.msk.f32.mxu1 %vm234_vm0, %v737_v57  ;;  %v538_v54 = vsel %vm513_vm2, %v1968_v53, 0.0 }
 0x2eb   : > { %v1627_v60 = vpack.c.bf16 %v1721_v58, %v1720_v59  ;;  %v1461_v58 = vld [vmem:[%s2105_s2 + $0x8] sm:$0xff] }
 0x2ec   : > { %v1977_v61 = vpop.eup %1741  ;;  %v1724_v62 = vpop.permute.xlu1 %1723 }
 0x2ed   : > { %v1979_v63 = vpop.eup %1743  ;;  %v1726_v0 = vunpack.i.h.bf16 %v1724_v62  ;;  %v1725_v1 = vunpack.i.l.bf16 %v1724_v62  ;;  %1560 = vmatprep.mubr.msk.f32.mxu0 %vm513_vm2, %v1977_v61  ;;  %1629 = vmatprep.subr.msk.bf16.mxu1 %vm1939_vm1, %v1627_v60  ;;  %v544_v57 = vsel %vm513_vm2, %v1977_v61, 0.0 }
 0x2ee   : > { %1561 = vmatmul.mubr.msk.f32.vlgmr.msra.gmra.mrb[8].mxu0 %vm513_vm2, %v1979_v63  ;;  %v547_v56 = vsel %vm513_vm2, %v1979_v63, 0.0 }
 0x2ef   : > { %v1633_v2 = vpack.c.bf16 %v1726_v0, %v1725_v1  ;;  %1632 = vmatpush3.bf16.xpose.msk.msra.mxu1 %vm1939_vm1, %v1627_v60 }
 0x2f0   : > { %v739_v3 = vpop.permute.xlu1 %738 }
 0x2f1   : > { %1635 = vmatprep.subr.msk.bf16.mxu0 %vm1939_vm1, %v1633_v2 }
 0x2f3   : > { %1638 = vmatpush3.bf16.xpose.msk.msra.mxu0 %vm1939_vm1, %v1633_v2 }
 0x2f4   : > { %v828_v4 = vpop.permute.xlu1 %827 }
 0x2f5   : > { %1574 = vmatprep.mubr.msk.f32.mxu0 %vm234_vm0, %v828_v4 }
 0x2f6   : > { %1568 = vmatmul.mubr.msk.f32.vlgmr.msra.gmra.mrb[2].mxu1 %vm234_vm0, %v739_v3 }
 0x2f8   : > { %v830_v5 = vpop.permute.xlu1 %829 }
 0x2fa   : > { %1575 = vmatmul.mubr.msk.f32.vlgmr.msra.gmra.mrb[10].mxu0 %vm234_vm0, %v830_v5 }
 0x3bc   : > { %v1996_v6 = vpop.f32.mrb[0].mxu1 }
 0x3bd   : > { %v1998_v8 = vpop.f32.mrb[1].mxu1 }
 0x3c1   : > { %v2000_v9 = vpop.f32.mrb[8].mxu0 }
 0x3c2   : > { %v2002_v11 = vpop.f32.mrb[9].mxu0 }
 0x3c9   : > { %v1569_v14 = vpop.f32.mrb[2].mxu1 }
 0x3ca   : > { %v824_v15 = vadd.f32 %v1569_v14, %v1448_v12  ;;  %v818_v16 = vpop.f32.mrb[3].mxu1 }
 0x3cb   : > { %v819_v17 = vadd.f32 %v1447_v13, %v818_v16 }
 0x3cc   : > { %v921_v18 = vsel %vm513_vm2, %v824_v15, -inf }
 0x3cd   : > { %v1576_v19 = vpop.f32.mrb[10].mxu0  ;;  %922 = vmax.xlane.f32.xlu0 %v921_v18  ;;  %v918_v20 = vsel %vm513_vm2, %v819_v17, -inf }
 0x3ce   : > { %v915_v21 = vadd.f32 %v1576_v19, %v1448_v12  ;;  %v909_v22 = vpop.f32.mrb[11].mxu0  ;;  %919 = vmax.xlane.f32.xlu1 %v918_v20 }
 0x3cf   : > { %v910_v23 = vadd.f32 %v1447_v13, %v909_v22 }
 0x3d0   : > { %v927_v24 = vsel %vm513_vm2, %v915_v21, -inf }
 0x3d1   : > { %928 = vmax.xlane.f32.xlu0 %v927_v24  ;;  %v924_v25 = vsel %vm513_vm2, %v910_v23, -inf }
 0x3d2   : > { %925 = vmax.xlane.f32.xlu1 %v924_v25 }
 0x3e3   : > { %1728 = vrot.lane.b32.xlu1 %v1931_v7, %s1837_s8 }
 0x3e7   : > { %1733 = vrot.lane.b32.xlu0 %v1934_v10, %s1837_s8  ;;  %s1838_s8 = smov [#allocation2]  }
 0x3e8   : > { %s1773_s9 = sshll.u32 %s1838_s8, 4  ;;  %s1774_s9 = int_to_ptr.vmem [resolvable:$false] %s1773_s9 }
 0x3e9   : > { %s1775_s10 = scalar_lea.vmem %s1774_s9, 1024  ;;  %p1776_p0 = scmp.lt.s32.totalorder %s2055_s23, %s1774_s9 }
 0x3ea   : > { %p1777_p1 = scmp.lt.s32.totalorder %s1775_s10, %s1769_s22 }
 0x3ec   : > { %p1778_p2 = por %p1777_p1, %p1776_p0 }
 0x3ee   : > { %p1779_p3 = pnand %p1778_p2, %p1772_p13 }
 0x45a   : > { %v923_v26 = vpop.xlane.xlu0 %922 }
 0x45b   : > { %v931_v27 = vsub.f32 %v824_v15, %v923_v26  ;;  %v920_v28 = vpop.xlane.xlu1 %919 }
 0x45c   : > { %v930_v29 = vsub.f32 %v819_v17, %v920_v28 }
 0x45d   : > { %v936_v30 = vmul.f32 1.442695, %v931_v27 }
 0x45e   : > { %v934_v31 = vmul.f32 1.442695, %v930_v29  ;;  %v929_v32 = vpop.xlane.xlu0 %928 }
 0x45f   : > { %1745 = vpow2.f32 %v936_v30  ;;  %v933_v33 = vsub.f32 %v915_v21, %v929_v32  ;;  %v926_v34 = vpop.xlane.xlu1 %925 }
 0x460   : > { %1747 = vpow2.f32 %v934_v31  ;;  %v932_v35 = vsub.f32 %v910_v23, %v926_v34 }
 0x461   : > { %v940_v36 = vmul.f32 1.442695, %v933_v33 }
 0x462   : > { %v938_v37 = vmul.f32 1.442695, %v932_v35  ;;  %v1734_v38 = vpop.permute.xlu0 %1733 }
 0x463   : > { %1749 = vpow2.f32 %v940_v36  ;;  %v1736_v39 = vunpack.i.h.bf16 %v1734_v38  ;;  %v1735_v7 = vunpack.i.l.bf16 %v1734_v38  ;;  %v1729_v40 = vpop.permute.xlu1 %1728 }
 0x464   : > { %1751 = vpow2.f32 %v938_v37  ;;  %v1731_v10 = vunpack.i.h.bf16 %v1729_v40  ;;  %v1730_v41 = vunpack.i.l.bf16 %v1729_v40 }
 0x465   : > { %v1643_v42 = vpack.c.bf16 %v1736_v39, %v1735_v7 }
 0x466   : > { %v1639_v43 = vpack.c.bf16 %v1731_v10, %v1730_v41 }
 0x467   : > { %1644 = vmatprep.subr.bf16.mxu0 %v1643_v42 }
 0x468   : > { %1640 = vmatprep.subr.bf16.mxu1 %v1639_v43  ;;  %1646 = vmatpush3.bf16.msra.mxu0 %v1643_v42 }
 0x469   : > { %v1746_v44 = vpop.eup %1745  ;;  %1642 = vmatpush3.bf16.msra.mxu1 %v1639_v43 }
 0x46a   : > { %v1748_v45 = vpop.eup %1747  ;;  %v945_v46 = vsel %vm513_vm2, %v1746_v44, 0.0  ;;  %1591 = vmatprep.subr.mxu1 %v1461_v58 }
 0x46b   : > { %946 = vadd.xlane.f32.xlu0 %v945_v46  ;;  %1581 = vmatprep.mubr.msk.f32.mxu1 %vm513_vm2, %v1748_v45  ;;  %v942_v47 = vsel %vm513_vm2, %v1748_v45, 0.0 }
 0x46c   : > { %943 = vadd.xlane.f32.xlu1 %v942_v47  ;;  %1582 = vmatmul.mubr.msk.f32.vlgmr.msra.gmra.mrb[4].mxu1 %vm513_vm2, %v1746_v44 }
 0x46d   : > { %v1750_v48 = vpop.eup %1749  ;;  %1592 = vmatpush3.msra.mxu1 %v1461_v58 }
 0x46e   : > { %v1752_v49 = vpop.eup %1751  ;;  %v951_v50 = vsel %vm513_vm2, %v1750_v48, 0.0  ;;  %1599 = vmatprep.subr.mxu1 %v732_v55 }
 0x46f   : > { %952 = vadd.xlane.f32.xlu0 %v951_v50  ;;  %1588 = vmatprep.mubr.msk.f32.mxu0 %vm513_vm2, %v1752_v49  ;;  %v948_v51 = vsel %vm513_vm2, %v1752_v49, 0.0 }
 0x470   : > { %1589 = vmatmul.mubr.msk.f32.vlgmr.msra.gmra.mrb[12].mxu0 %vm513_vm2, %v1750_v48  ;;  %949 = vadd.xlane.f32.xlu1 %v948_v51 }
 0x473   : > { %542 = vadd.xlane.f32.xlu0 %v541_v52 }
 0x474   : > { %539 = vadd.xlane.f32.xlu1 %v538_v54 }
 0x477   : > { %548 = vadd.xlane.f32.xlu0 %v547_v56 }
 0x478   : > { %545 = vadd.xlane.f32.xlu1 %v544_v57 }
 0x4f8   : > { %v947_v59 = vpop.xlane.xlu0 %946 }
 0x4f9   : > { %v944_v53 = vpop.xlane.xlu1 %943 }
 0x4fa   : > { %1753 = vrcp.f32 %v944_v53 }
 0x4fb   : > { %1755 = vrcp.f32 %v947_v59 }
 0x4fc   : > { %v953_v62 = vpop.xlane.xlu0 %952 }
 0x4fd   : > { %v950_v60 = vpop.xlane.xlu1 %949 }
 0x4fe   : > { %1757 = vrcp.f32 %v950_v60 }
 0x500   : > { %v543_v61 = vpop.xlane.xlu0 %542 }
 0x501   : > { %v540_v63 = vpop.xlane.xlu1 %539 }
 0x502   : > { %1759 = vrcp.f32 %v540_v63 }
 0x503   : > { %1761 = vrcp.f32 %v953_v62 }
 0x504   : > { %1763 = vrcp.f32 %v543_v61  ;;  %v549_v1 = vpop.xlane.xlu0 %548  ;;  %v1754_v3 = vpop.eup %1753 }
 0x505   : > { %v546_v0 = vpop.xlane.xlu1 %545  ;;  %v1756_v5 = vpop.eup %1755 }
 0x506   : > { %1765 = vrcp.f32 %v546_v0 }
 0x507   : > { %1767 = vrcp.f32 %v549_v1 }
 0x508   : > { %v1758_v14 = vpop.eup %1757 }
 0x50c   : > { %v1760_v16 = vpop.eup %1759 }
 0x50d   : > { %v1762_v18 = vpop.eup %1761  ;;  %v725_v22 = vmul.f32 %v1760_v16, %v1998_v8  ;;  %v1470_v8 = vld [vmem:[%s2106_s3] ss:$0 sm:$0xff] }
 0x50e   : > { %v1764_v21 = vpop.eup %1763 }
 0x50f   : > { %v727_v24 = vmul.f32 %v1764_v21, %v1996_v6 }
 0x510   : > { %v1766_v23 = vpop.eup %1765 }
 0x511   : > { %v1768_v25 = vpop.eup %1767  ;;  %v729_v26 = vmul.f32 %v1766_v23, %v2002_v11 }
 0x512   : > { %v731_v27 = vmul.f32 %v1768_v25, %v2000_v9 }
 0x53f   : > { %v1583_v2 = vpop.f32.mrb[4].mxu1 }
 0x540   : > { %v1032_v4 = vpop.f32.mrb[5].mxu1  ;;  %v1131_v13 = vmul.f32 %v1756_v5, %v1583_v2 }
 0x541   : > { %v1129_v12 = vmul.f32 %v1754_v3, %v1032_v4 }
 0x543   : > { %v1590_v15 = vpop.f32.mrb[12].mxu0  ;;  %1593 = vmatprep.mubr.msk.f32.mxu1 %vm234_vm0, %v1129_v12 }
 0x544   : > { %v1119_v17 = vpop.f32.mrb[13].mxu0  ;;  %1594 = vmatmul.mubr.msk.f32.vlgmr.msra.gmra.mrb[6].mxu1 %vm234_vm0, %v1131_v13  ;;  %v1135_v20 = vmul.f32 %v1762_v18, %v1590_v15 }
 0x545   : > { %v1133_v19 = vmul.f32 %v1758_v14, %v1119_v17  ;;  %1600 = vmatpush3.msra.mxu1 %v732_v55 }
 0x547   : > { %1596 = vmatprep.mubr.msk.f32.mxu1 %vm234_vm0, %v1133_v19 }
 0x548   : > { %1597 = vmatmul.mubr.msk.f32.gmra.mrb[8].mxu1 %vm234_vm0, %v1135_v20 }
 0x549   : > { %1601 = vmatprep.mubr.msk.f32.mxu1 %vm234_vm0, %v725_v22 }
 0x54c   : > { %1602 = vmatmul.mubr.msk.f32.vlgmr.msra.gmra.mrb[6].mxu1 %vm234_vm0, %v727_v24 }
 0x54d   : > { %1604 = vmatprep.mubr.msk.f32.mxu1 %vm234_vm0, %v729_v26 }
 0x550   : > { %1605 = vmatmul.mubr.msk.f32.gmra.mrb[8].mxu1 %vm234_vm0, %v731_v27 }
 0x61f   : > { %v1603_v28 = vpop.f32.mrb[6].mxu1 }
 0x620   : > { %v1339_v6 = vadd.f32 %v1603_v28, %v1470_v8  ;;  %v1313_v29 = vpop.f32.mrb[7].mxu1 }
 0x621   : > { %v1338_v11 = vadd.f32 %v1470_v8, %v1313_v29 }
 0x622   : > { %1343 = vst [vmem:[%s220_s17 + $0x8] sm:$0xff] %v1339_v6 }
 0x623   : > { %1342 = vst [vmem:[%s220_s17] sm:$0xff] %v1338_v11  ;;  %v1606_v30 = vpop.f32.mrb[8].mxu1 }
 0x624   : > { %v1341_v9 = vadd.f32 %v1606_v30, %v1470_v8  ;;  %v1323_v31 = vpop.f32.mrb[9].mxu1 }
 0x625   : > { %v1340_v32 = vadd.f32 %v1470_v8, %v1323_v31 }
 0x626   : > { %1345 = vst [vmem:[%s220_s17 + $0x18] sm:$0xff] %v1341_v9 }
 0x627   : > { %1344 = vst [vmem:[%s220_s17 + $0x10] sm:$0xff] %v1340_v32 }
 0x628   : > { %1782 = shalt.err (!%p1779_p3)
}
 0x629   : > { %s1783_s11 = scalar_lea.hbm %s2060_s6, 512  ;;  %s1787_s14 = scalar_lea.hbm %s2108_s5, 1024 }
 0x62a   : > { %p1784_p4 = scmp.ne.s32.totalorder %s2060_s6, %s1783_s11  ;;  %p1788_p9 = scmp.lt.u32.totalorder %s2060_s6, %s2108_s5 }
 0x62b   : > { %p1789_p10 = scmp.lt.u32.totalorder %s1787_s14, %s1783_s11  ;;  %p1791_p12 = scmp.lt.u32.totalorder %s1783_s11, %s2060_s6 }
 0x62c   : > { %p1785_p7 = pnand %p1784_p4, %p1909_p5 }
 0x62d   : > { %p1790_p11 = por %p1789_p10, %p1788_p9 }
 0x62e   : > { %p1786_p8 = pneg %p1785_p7 }
 0x62f   : > { %p1792_p13 = por %p1791_p12, %p1790_p11 }
 0x631   : > { %p1793_p0 = pnand %p1792_p13, %p1786_p8 }
 0x633   : > { %1796 = shalt.err (!%p1793_p0)
}
 0x634   : > { %s1839_s17 = smov 128   ;;  %s1840_s25 = smov 8  }
 0x635   : > { %1651 = dma.vmem_to_hbm [thread:$0]  (%p1909_p5), %s2055_s23, 512, %s2060_s6, %s2062_s7, %s1839_s17, %s1839_s17, %s1840_s25  }
 0x636 PF: > { %p1657_p1 = scmp.ge.s32.totalorder %s1831_s21, 2  ;;  %s1376_s26 = sand.u32 1, %s1819_s18  }
 0x637   : > { %s1377_s30 = scalar_lea.sflag [#allocation3], %s1376_s26 }
 0x638   : > { %p1654_p2 = pnand %p1657_p1, %p1913_p6 }
 0x63a   : > { %1814 = dma.done.wait (!%p1654_p2), %s1377_s30, 512  }
 0x63b   : > { %1816 = vsyncadd (!%p1654_p2), %s1377_s30, 4294966784  ;;  %p15_p3 = scmp.ge.s32.totalorder %s1896_s24, 4   ;;  %s2113_s18 = smov %s1823_s19 }
 0x63c   : > { %s2114_s19 = smov %s1827_s20  ;;  %s2115_s20 = smov %s1907_s27 }
 0x63d   : > { %s2116_s21 = smov %s1896_s24  ;;  %17 = sbr.rel (!%p15_p3) target bundleno = 3 (0x3), region = 77 }
 0x644   :  { %1382 = vsyncpa [#allocation3], 1 }
 0x645   :  { %1384 = vsyncpa [#allocation3 + $0x1], 1 }

</bundles_post_ra>
